<compile_context>
chip_gen: v7x
topology: tpu7x:2x2x1
jax: 0.10.0
libtpu: 0.0.40
codegen_flags: <defaults>
</compile_context>

<pallas_src>
import math
import functools

import jax
import jax.numpy as jnp
from jax.experimental import pallas as pl
from jax.experimental.pallas import tpu as pltpu


def _round_up(a, b):
    return (a + b - 1) // b * b


def _tpu_defaults():
    """Per-generation (tm, tf, vmem_limit_bytes) defaults."""
    kind = ""
    try:
        kind = jax.devices()[0].device_kind.lower()
    except Exception:
        pass
    if "v7" in kind:
        # 64 MiB physical VMEM per TC: small weight slabs, leave headroom for
        # double-buffering; tm=512 keeps the kernel MXU-bound (~310 FLOP/B).
        return 512, 256, 52 << 20
    if "v6" in kind:
        # Crossover ~650 FLOP/byte -> big token tile; 128 MiB VMEM allows it.
        return 768, 512, 110 << 20
    if "v5" in kind:
        # Crossover ~240 FLOP/byte already met at tm=256; larger tf halves
        # the number of F steps (accumulator RMW + per-step overhead).
        return 256, 1024, 100 << 20
    # Unknown hardware / interpret mode: conservative, fits a 64 MiB part.
    return 256, 512, 48 << 20


def _mlp_kernel(x_ref, w13_ref, w2_ref, o_ref, acc_ref, *, tf):
    # Grid = (M tiles [parallel], F tiles [arbitrary / reduction]).
    # x_ref:   (tm, H)        token tile (native dtype == weight dtype)
    # w13_ref: (1, H, 2*tf)   fused [gate | up] weight slab for this F tile
    # w2_ref:  (1, tf, H)     down-projection slab for this F tile
    # o_ref:   (tm, H)        output tile (written on last F tile)
    # acc_ref: (tm, H) f32    VMEM accumulator, resident across the F axis
    f = pl.program_id(1)

    @pl.when(f == 0)
    def _():
        acc_ref[...] = jnp.zeros_like(acc_ref)

    x = x_ref[...]                                   # native dtype for MXU
    h = jnp.dot(x, w13_ref[0],
                preferred_element_type=jnp.float32)  # (tm, 2*tf), f32 accum
    h1 = h[:, :tf]                                   # gate (w1) part
    h3 = h[:, tf:]                                   # up   (w3) part

    gated = (h1 * jax.nn.sigmoid(h1)) * h3           # SiLU(h1) * h3, f32

    acc_ref[...] += jnp.dot(gated.astype(w2_ref.dtype), w2_ref[0],
                            preferred_element_type=jnp.float32)

    @pl.when(f == pl.num_programs(1) - 1)
    def _():
        o_ref[...] = acc_ref[...].astype(o_ref.dtype)


def prepare_llama_mlp2_weights(w1, w2, w3, *, tf=None):
    """One-time weight repack (do this at model-load time in real usage).

    w1, w3: (F, H) PyTorch nn.Linear weights (gate / up); w2: (H, F) (down).
    Returns:
      w13: (nf, H, 2*tf)  per-F-tile fused [gate | up] slabs, transposed
      w2r: (nf, tf, H)    per-F-tile down-projection slabs, transposed
    F is zero-padded up to a multiple of tf (padded channels contribute 0:
    silu(0)*0 == 0). tf and H must be lane-aligned (multiples of 128).
    """
    F, H = w1.shape
    assert w3.shape == (F, H)
    assert w2.shape == (H, F)
    assert H % 128 == 0, "hidden dim must be a multiple of 128 (lane width)"

    if tf is None:
        _, tf, _ = _tpu_defaults()
    # Never use a slab bigger than the (128-aligned) F extent.
    tf = min(tf, _round_up(F, 128))
    assert tf % 128 == 0, "tf must be a multiple of 128 (lane-aligned split)"

    Fp = _round_up(F, tf)

    w1t, w3t, w2t = w1.T, w3.T, w2.T                 # (H,F), (H,F), (F,H)
    if Fp != F:
        pad = Fp - F
        w1t = jnp.pad(w1t, ((0, 0), (0, pad)))
        w3t = jnp.pad(w3t, ((0, 0), (0, pad)))
        w2t = jnp.pad(w2t, ((0, pad), (0, 0)))

    nf = Fp // tf
    w1b = w1t.reshape(H, nf, tf).transpose(1, 0, 2)  # (nf, H, tf)
    w3b = w3t.reshape(H, nf, tf).transpose(1, 0, 2)  # (nf, H, tf)
    w13 = jnp.concatenate([w1b, w3b], axis=-1)       # (nf, H, 2*tf)
    w2r = w2t.reshape(nf, tf, H)                     # (nf, tf, H)
    return w13, w2r


def llama_mlp2_prepared(x, w13, w2r, *, tm=None, vmem_limit_bytes=None):
    """Apply the MLP given pre-packed weights. x: [..., H].

    Production / benchmark paths should call THIS with weights packed once by
    prepare_llama_mlp2_weights (never route through llama_mlp2 per step).
    """
    H = x.shape[-1]
    nf, h_chk, two_tf = w13.shape
    assert h_chk == H
    tf = two_tf // 2
    assert w2r.shape == (nf, tf, H)

    d_tm, _, d_vmem = _tpu_defaults()
    if tm is None:
        tm = d_tm
    if vmem_limit_bytes is None:
        vmem_limit_bytes = d_vmem

    lead = x.shape[:-1]
    out_dtype = x.dtype
    x2d = x.reshape(-1, H)

    # Normalize dtypes: matching activation/weight dtype is the MXU fast path
    # on every generation (no per-F-step VPU upcast of the weight slab).
    if x2d.dtype != w13.dtype:
        x2d = x2d.astype(w13.dtype)

    M = x2d.shape[0]
    # Token tile: always a multiple of 128 rows (MXU-friendly, no ragged
    # second-minor dims / masked stores); pad M up to the tile.
    tm = max(128, min(_round_up(tm, 128), _round_up(M, 128)))
    Mp = _round_up(M, tm)
    if Mp != M:
        x2d = jnp.pad(x2d, ((0, Mp - M), (0, 0)))

    n_m = Mp // tm
    grid = (n_m, nf)

    Fp = nf * tf
    w_item = jnp.dtype(w13.dtype).itemsize
    x_item = jnp.dtype(x2d.dtype).itemsize
    cost = pl.CostEstimate(
        flops=6 * Mp * H * Fp,                       # three GEMMs
        transcendentals=Mp * Fp,                     # sigmoid per gate elem
        bytes_accessed=((w13.size + w2r.size) * w_item * n_m   # re-streamed/M-tile
                        + (x2d.size + Mp * H) * x_item),
    )

    out2d = pl.pallas_call(
        functools.partial(_mlp_kernel, tf=tf),
        out_shape=jax.ShapeDtypeStruct((Mp, H), out_dtype),
        grid_spec=pltpu.PrefetchScalarGridSpec(
            num_scalar_prefetch=0,
            grid=grid,
            in_specs=[
                pl.BlockSpec((tm, H), lambda i, f: (i, 0)),
                pl.BlockSpec((1, H, 2 * tf), lambda i, f: (f, 0, 0)),
                pl.BlockSpec((1, tf, H), lambda i, f: (f, 0, 0)),
            ],
            out_specs=pl.BlockSpec((tm, H), lambda i, f: (i, 0)),
            scratch_shapes=[pltpu.VMEM((tm, H), jnp.float32)],
        ),
        compiler_params=pltpu.CompilerParams(
            dimension_semantics=("parallel", "arbitrary"),
            vmem_limit_bytes=vmem_limit_bytes,
        ),
        cost_estimate=cost,
    )(x2d, w13, w2r)

    if Mp != M:
        out2d = out2d[:M]
    return out2d.reshape(*lead, H)


def llama_mlp2(x, w1, w2, w3, *, tm=None, tf=None, vmem_limit_bytes=None):
    """Convenience wrapper (packs weights per call; real models should call
    prepare_llama_mlp2_weights once at load time and reuse the packed
    weights via llama_mlp2_prepared)."""
    w13, w2r = prepare_llama_mlp2_weights(w1, w2, w3, tf=tf)
    return llama_mlp2_prepared(x, w13, w2r, tm=tm,
                               vmem_limit_bytes=vmem_limit_bytes)


def _trunc_normal(key, shape, std):
    # Matches torch.nn.init.trunc_normal_(std=std) closely enough for a
    # deterministic synthetic init (truncation at +/- 2 std-units).
    return std * jax.random.truncated_normal(key, -2.0, 2.0, shape, jnp.float32)


def _reference(x, w1, w2, w3):
    h1 = x @ w1.T
    h3 = x @ w3.T
    return (jax.nn.silu(h1) * h3) @ w2.T


if __name__ == "__main__":
    # Small but lane-aligned shapes: batch=2, seq=8, hidden=128, mlp=256
    # (dims = [128, 256, 128] in the PyTorch module's terms).
    batch, seq, hidden, mlp = 2, 8, 128, 256

    key = jax.random.PRNGKey(0)
    kx, k1, k2, k3 = jax.random.split(key, 4)

    x = jax.random.normal(kx, (batch, seq, hidden), jnp.float32)
    w1 = _trunc_normal(k1, (mlp, hidden), math.sqrt(2.0 / hidden))   # in=hidden
    w3 = _trunc_normal(k3, (mlp, hidden), math.sqrt(2.0 / hidden))   # in=hidden
    w2 = _trunc_normal(k2, (hidden, mlp), math.sqrt(2.0 / mlp))      # in=mlp

    # 1) f32 path, per-generation default tiles (single F tile at this size).
    out = jax.block_until_ready(llama_mlp2(x, w1, w2, w3))
    ref = _reference(x, w1, w2, w3)
    assert out.shape == (batch, seq, hidden)
    assert jnp.allclose(out, ref, atol=1e-3, rtol=1e-3), (
        float(jnp.max(jnp.abs(out - ref))))

    # 2) Ragged token count (M padding) + tiled/streamed F axis (tf < mlp),
    #    exercising the VMEM accumulator across the reduction axis.
    x_odd = x[:, :5, :]
    out_odd = jax.block_until_ready(llama_mlp2(x_odd, w1, w2, w3, tf=128))
    ref_odd = _reference(x_odd, w1, w2, w3)
    assert out_odd.shape == x_odd.shape
    assert jnp.allclose(out_odd, ref_odd, atol=1e-3, rtol=1e-3), (
        float(jnp.max(jnp.abs(out_odd - ref_odd))))

    # 3) bf16 activations + weights (native MXU dtype, f32 accumulation),
    #    using the pre-packed-weights production path directly.
    xb = x.astype(jnp.bfloat16)
    w1b, w2b, w3b = (w.astype(jnp.bfloat16) for w in (w1, w2, w3))
    w13b, w2rb = prepare_llama_mlp2_weights(w1b, w2b, w3b, tf=128)
    out_bf = jax.block_until_ready(llama_mlp2_prepared(xb, w13b, w2rb))
    ref_bf = _reference(xb.astype(jnp.float32), w1b.astype(jnp.float32),
                        w2b.astype(jnp.float32), w3b.astype(jnp.float32))
    assert jnp.allclose(out_bf.astype(jnp.float32), ref_bf, atol=2e-1, rtol=2e-1), (
        float(jnp.max(jnp.abs(out_bf.astype(jnp.float32) - ref_bf))))

    # 4) Mixed dtypes (f32 x, bf16 packed weights) are normalized at the
    #    wrapper, never inside the kernel.
    out_mix = jax.block_until_ready(llama_mlp2_prepared(x, w13b, w2rb))
    assert out_mix.dtype == x.dtype
    assert jnp.allclose(out_mix, ref_bf, atol=2e-1, rtol=2e-1), (
        float(jnp.max(jnp.abs(out_mix - ref_bf))))

    print("KERNEL_OK")
</pallas_src>

<mosaic_0001>
module attributes {stable_mosaic.version = 11 : i64} {
  func.func @_mlp_kernel(%arg0: i32, %arg1: i32, %arg2: memref<128x128xf32, #tpu.memory_space<vmem>>, %arg3: memref<1x128x512xf32, #tpu.memory_space<vmem>>, %arg4: memref<1x256x128xf32, #tpu.memory_space<vmem>>, %arg5: memref<128x128xf32, #tpu.memory_space<vmem>>, %arg6: memref<128x128xf32, #tpu.memory_space<vmem>>) attributes {dimension_semantics = [#tpu.dimension_semantics<parallel>, #tpu.dimension_semantics<arbitrary>], iteration_bounds = array<i64: 1, 1>, scalar_prefetch = 0 : i64, scratch_operands = 1 : i64, tpu.core_type = #tpu.core_type<tc>, window_params = [{transform_indices = @transform_0, window_bounds = array<i64: 128, 128>}, {transform_indices = @transform_1, window_bounds = array<i64: 1, 128, 512>}, {transform_indices = @transform_2, window_bounds = array<i64: 1, 256, 128>}, {transform_indices = @transform_3, window_bounds = array<i64: 128, 128>}]} {
    %c0_i32 = arith.constant 0 : i32
    %0 = arith.cmpi eq, %arg1, %c0_i32 : i32
    %1 = arith.extui %0 : i1 to i32
    %c0_i32_0 = arith.constant 0 : i32
    %2 = arith.cmpi ne, %1, %c0_i32_0 : i32
    scf.if %2 {
      %cst_16 = arith.constant 0.000000e+00 : f32
      %25 = vector.broadcast %cst_16 : f32 to vector<128x128xf32>
      %c0_17 = arith.constant 0 : index
      %c0_18 = arith.constant 0 : index
      %26 = vector.load %arg6[%c0_17, %c0_18] : memref<128x128xf32, #tpu.memory_space<vmem>>, vector<128x128xf32>
      tpu.vector_store %arg6[%c0_17, %c0_18], %25 {strides = array<i32>} : memref<128x128xf32, #tpu.memory_space<vmem>>, vector<128x128xf32>,
    } else {
    }
    %c0 = arith.constant 0 : index
    %c0_1 = arith.constant 0 : index
    %3 = vector.load %arg2[%c0, %c0_1] : memref<128x128xf32, #tpu.memory_space<vmem>>, vector<128x128xf32>
    %c0_2 = arith.constant 0 : index
    %c0_3 = arith.constant 0 : index
    %c0_4 = arith.constant 0 : index
    %4 = vector.load %arg3[%c0_2, %c0_3, %c0_4] : memref<1x128x512xf32, #tpu.memory_space<vmem>>, vector<1x128x512xf32>
    %5 = vector.shape_cast %4 : vector<1x128x512xf32> to vector<128x512xf32>
    %cst = arith.constant dense<0.000000e+00> : vector<128x512xf32>
    %6 = tpu.matmul %3, %5, %cst {dimension_numbers = #tpu.dot_dimension_numbers<[1], [0], [0], [1], [0, 0, 1, 1], [], []>} : vector<128x128xf32>, vector<128x512xf32>, vector<128x512xf32> -> vector<128x512xf32>
    %7 = vector.extract_strided_slice %6 {offsets = [0, 0], sizes = [128, 256], strides = [1, 1]} : vector<128x512xf32> to vector<128x256xf32>
    %8 = vector.extract_strided_slice %6 {offsets = [0, 256], sizes = [128, 256], strides = [1, 1]} : vector<128x512xf32> to vector<128x256xf32>
    %9 = arith.negf %7 : vector<128x256xf32>
    %10 = math.exp %9 : vector<128x256xf32>
    %cst_5 = arith.constant 1.000000e+00 : f32
    %11 = vector.broadcast %cst_5 : f32 to vector<128x256xf32>
    %12 = arith.addf %11, %10 : vector<128x256xf32>
    %13 = arith.divf %11, %12 : vector<128x256xf32>
    %14 = arith.mulf %7, %13 : vector<128x256xf32>
    %15 = arith.mulf %14, %8 : vector<128x256xf32>
    %c0_6 = arith.constant 0 : index
    %c0_7 = arith.constant 0 : index
    %16 = vector.load %arg6[%c0_6, %c0_7] : memref<128x128xf32, #tpu.memory_space<vmem>>, vector<128x128xf32>
    %c0_8 = arith.constant 0 : index
    %c0_9 = arith.constant 0 : index
    %c0_10 = arith.constant 0 : index
    %17 = vector.load %arg4[%c0_8, %c0_9, %c0_10] : memref<1x256x128xf32, #tpu.memory_space<vmem>>, vector<1x256x128xf32>
    %18 = vector.shape_cast %17 : vector<1x256x128xf32> to vector<256x128xf32>
    %cst_11 = arith.constant dense<0.000000e+00> : vector<128x128xf32>
    %19 = tpu.matmul %15, %18, %cst_11 {dimension_numbers = #tpu.dot_dimension_numbers<[1], [0], [0], [1], [0, 0, 1, 1], [], []>} : vector<128x256xf32>, vector<256x128xf32>, vector<128x128xf32> -> vector<128x128xf32>
    %20 = arith.addf %16, %19 : vector<128x128xf32>
    %c0_12 = arith.constant 0 : index
    %c0_13 = arith.constant 0 : index
    %21 = vector.load %arg6[%c0_12, %c0_13] : memref<128x128xf32, #tpu.memory_space<vmem>>, vector<128x128xf32>
    tpu.vector_store %arg6[%c0_12, %c0_13], %20 {strides = array<i32>} : memref<128x128xf32, #tpu.memory_space<vmem>>, vector<128x128xf32>,
    %c0_i32_14 = arith.constant 0 : i32
    %22 = arith.cmpi eq, %arg1, %c0_i32_14 : i32
    %23 = arith.extui %22 : i1 to i32
    %c0_i32_15 = arith.constant 0 : i32
    %24 = arith.cmpi ne, %23, %c0_i32_15 : i32
    scf.if %24 {
      %c0_16 = arith.constant 0 : index
      %c0_17 = arith.constant 0 : index
      %25 = vector.load %arg6[%c0_16, %c0_17] : memref<128x128xf32, #tpu.memory_space<vmem>>, vector<128x128xf32>
      %c0_18 = arith.constant 0 : index
      %c0_19 = arith.constant 0 : index
      %26 = vector.load %arg5[%c0_18, %c0_19] : memref<128x128xf32, #tpu.memory_space<vmem>>, vector<128x128xf32>
      tpu.vector_store %arg5[%c0_18, %c0_19], %25 {strides = array<i32>} : memref<128x128xf32, #tpu.memory_space<vmem>>, vector<128x128xf32>,
    } else {
    }
    return
  }
  func.func @transform_0(%arg0: i32, %arg1: i32) -> (i32, i32) {
    %c0_i32 = arith.constant 0 : i32
    %c0_i32_0 = arith.constant 0 : i32
    return %arg0, %c0_i32 : i32, i32
  }
  func.func @transform_1(%arg0: i32, %arg1: i32) -> (i32, i32, i32) {
    %c0_i32 = arith.constant 0 : i32
    %c0_i32_0 = arith.constant 0 : i32
    %c0_i32_1 = arith.constant 0 : i32
    return %arg1, %c0_i32, %c0_i32_0 : i32, i32, i32
  }
  func.func @transform_2(%arg0: i32, %arg1: i32) -> (i32, i32, i32) {
    %c0_i32 = arith.constant 0 : i32
    %c0_i32_0 = arith.constant 0 : i32
    %c0_i32_1 = arith.constant 0 : i32
    return %arg1, %c0_i32, %c0_i32_0 : i32, i32, i32
  }
  func.func @transform_3(%arg0: i32, %arg1: i32) -> (i32, i32) {
    %c0_i32 = arith.constant 0 : i32
    %c0_i32_0 = arith.constant 0 : i32
    return %arg0, %c0_i32 : i32, i32
  }
}

</mosaic_0001>

<bundles_post_ra>
// kernel: tpu_custom_call.1
= control target key start
LH: loop header
LB: loop body
LE: loop exit
PB: predicated region body
PF: predicated region fallthrough
CT: control target
= control target key end

     0   :  { %8 = vsyncpa [#allocation4], 0  ;;  %s1794_s0 = inlined_call_operand.hbm [shape: f32[128,128], index: 0, kind: input, shape index: {}]   ;;  %s1795_s1 = inlined_call_operand.hbm [shape: f32[1,128,512], index: 1, kind: input, shape index: {}]   ;;  %s1796_s2 = inlined_call_operand.hbm [shape: f32[1,256,128], index: 2, kind: input, shape index: {}]   ;;  %s1797_s3 = inlined_call_operand.hbm [shape: f32[128,128], index: 3, kind: output, shape index: {}]  }
   0x1   :  { %9 = vsyncpa [#allocation7], 0 }
   0x2   :  { %10 = vsyncpa [#allocation5], 0  ;;  %s1467_s12 = smov [#allocation6]   ;;  %s1373_s16 = scalar_lea.hbm %s1795_s1, 8192 }
   0x3   :  { %s28_s13 = sshll.u32 %s1467_s12, 4  ;;  %p1374_p0 = scmp.ne.s32.totalorder %s1795_s1, %s1373_s16  ;;  %s29_s13 = int_to_ptr.vmem [resolvable:$true] %s28_s13 }
   0x4   :  { %p1377_p1 = scmp.lt.u32.totalorder %s1373_s16, %s1795_s1 }
   0x6   :  { %p1379_p2 = pnand %p1377_p1, %p1374_p0 }
   0x8   :  { %1382 = shalt.err (!%p1379_p2)
}
   0x9   :  { %s1383_s21 = scalar_lea.vmem %s29_s13, 8192  ;;  %p1388_p4 = scmp.lt.s32.totalorder %s29_s13, %s29_s13 }
   0xa   :  { %p1384_p3 = scmp.ne.s32.totalorder %s29_s13, %s1383_s21  ;;  %p1389_p5 = scmp.lt.s32.totalorder %s1383_s21, %s1383_s21 }
   0xc   :  { %p1390_p6 = por %p1389_p5, %p1388_p4 }
   0xe   :  { %p1391_p7 = pnand %p1390_p6, %p1384_p3 }
  0x10   :  { %1394 = shalt.err (!%p1391_p7)
}
  0x11   :  { %s1468_s22 = smov 512   ;;  %s1469_s23 = smov 32  }
  0x12   :  { %34 = dma.hbm_to_vmem [thread:$0]  %s1795_s1, 8192, %s29_s13, [#allocation7], %s1468_s22, %s1468_s22, %s1469_s23  }
  0x13   :  { %s1470_s26 = smov [#allocation3]   ;;  %s1395_s30 = scalar_lea.hbm %s1794_s0, 2048 }
  0x14   :  { %s16_s27 = sshll.u32 %s1470_s26, 4  ;;  %p1396_p8 = scmp.ne.s32.totalorder %s1794_s0, %s1395_s30  ;;  %s17_s27 = int_to_ptr.vmem [resolvable:$true] %s16_s27 }
  0x15   :  { %p1399_p9 = scmp.lt.u32.totalorder %s1395_s30, %s1794_s0 }
  0x17   :  { %p1401_p10 = pnand %p1399_p9, %p1396_p8 }
  0x19   :  { %1404 = shalt.err (!%p1401_p10)
}
  0x1a   :  { %s1405_s8 = scalar_lea.vmem %s17_s27, 2048  ;;  %p1410_p12 = scmp.lt.s32.totalorder %s17_s27, %s17_s27 }
  0x1b   :  { %p1406_p11 = scmp.ne.s32.totalorder %s17_s27, %s1405_s8  ;;  %p1411_p13 = scmp.lt.s32.totalorder %s1405_s8, %s1405_s8 }
  0x1d   :  { %p1412_p0 = por %p1411_p13, %p1410_p12 }
  0x1f   :  { %p1413_p1 = pnand %p1412_p0, %p1406_p11 }
  0x21   :  { %1416 = shalt.err (!%p1413_p1)
}
  0x22   :  { %s1471_s1 = smov 128   ;;  %s1472_s9 = smov 8  }
  0x23   :  { %22 = dma.hbm_to_vmem [thread:$0]  %s1794_s0, 2048, %s17_s27, [#allocation4], %s1471_s1, %s1471_s1, %s1472_s9  }
  0x24   :  { %s1473_s12 = smov [#allocation8]   ;;  %s1417_s16 = scalar_lea.hbm %s1796_s2, 4096 }
  0x25   :  { %s40_s13 = sshll.u32 %s1473_s12, 4  ;;  %p1418_p2 = scmp.ne.s32.totalorder %s1796_s2, %s1417_s16  ;;  %s41_s13 = int_to_ptr.vmem [resolvable:$true] %s40_s13 }
  0x26   :  { %p1421_p3 = scmp.lt.u32.totalorder %s1417_s16, %s1796_s2 }
  0x28   :  { %p1423_p4 = pnand %p1421_p3, %p1418_p2 }
  0x2a   :  { %1426 = shalt.err (!%p1423_p4)
}
  0x2b   :  { %s1427_s21 = scalar_lea.vmem %s41_s13, 4096  ;;  %p1432_p6 = scmp.lt.s32.totalorder %s41_s13, %s41_s13 }
  0x2c   :  { %p1428_p5 = scmp.ne.s32.totalorder %s41_s13, %s1427_s21  ;;  %p1433_p7 = scmp.lt.s32.totalorder %s1427_s21, %s1427_s21 }
  0x2e   :  { %p1434_p8 = por %p1433_p7, %p1432_p6 }
  0x30   :  { %p1435_p9 = pnand %p1434_p8, %p1428_p5 }
  0x32   :  { %1438 = shalt.err (!%p1435_p9)
}
  0x33   :  { %46 = dma.hbm_to_vmem [thread:$0]  %s1796_s2, 4096, %s41_s13, [#allocation7], %s1471_s1, %s1471_s1, %s1472_s9  }
  0x34   :  { %1461 = dma.done.wait [#allocation4], 2048  }
  0x35   :  { %1462 = vsyncadd [#allocation4], 4294965248 }
  0x36   :  { %1463 = dma.done.wait [#allocation7], 12288  }
  0x37   :  { %1464 = vsyncadd [#allocation7], 4294955008  ;;  %v1474_v0 = vmov 0.0   ;;  %v93_v1 = vld [vmem:[#allocation6 + $0x8] sm:$0xff]  ;;  %v92_v3 = vld [vmem:[#allocation6] sm:$0xff]  ;;  %s1475_s2 = smov [#allocation9]  }
  0x38   :  { %220 = vmatprep.mubr.f32.mxu0 %v1474_v0  ;;  %268 = vmatprep.mubr.f32.mxu1 %v1474_v0  ;;  %v97_v2 = vld [vmem:[#allocation6 + $0x28] sm:$0xff]  ;;  %v96_v5 = vld [vmem:[#allocation6 + $0x20] sm:$0xff]  ;;  %v95_v48 = vld [vmem:[#allocation6 + $0x18] sm:$0xff]  ;;  %s999_s23 = sshll.u32 %s1475_s2, 4  ;;  %s1000_s23 = int_to_ptr.vmem [resolvable:$true] %s999_s23 }
  0x39   :  { %v1124_v4 = vpack.c.bf16 %v97_v2, %v93_v1  ;;  %v101_v6 = vld [vmem:[#allocation6 + $0x48] sm:$0xff]  ;;  %v1126_v8 = vpack.c.bf16 %v96_v5, %v92_v3  ;;  %v100_v10 = vld [vmem:[#allocation6 + $0x40] sm:$0xff]  ;;  %v99_v49 = vld [vmem:[#allocation6 + $0x38] sm:$0xff]  ;;  %s1439_s24 = scalar_lea.vmem %s1000_s23, 2048  ;;  %p1444_p11 = scmp.lt.s32.totalorder %s1000_s23, %s1000_s23 }
  0x3a   :  { %v105_v7 = vld [vmem:[#allocation6 + $0x68] sm:$0xff]  ;;  %v104_v11 = vld [vmem:[#allocation6 + $0x60] sm:$0xff]  ;;  %v1156_v51 = vpack.c.bf16 %v99_v49, %v95_v48  ;;  %v94_v52 = vld [vmem:[#allocation6 + $0x10] sm:$0xff]  ;;  %p1440_p10 = scmp.ne.s32.totalorder %s1000_s23, %s1439_s24  ;;  %p1445_p12 = scmp.lt.s32.totalorder %s1439_s24, %s1439_s24 }
  0x3b   :  { %v1128_v9 = vpack.c.bf16 %v105_v7, %v101_v6  ;;  %v109_v12 = vld [vmem:[#allocation6 + $0x88] sm:$0xff]  ;;  %1125 = vmatprep.subr.bf16.mxu0 %v1124_v4  ;;  %1220 = vmatprep.subr.bf16.mxu1 %v1124_v4  ;;  %v1130_v14 = vpack.c.bf16 %v104_v11, %v100_v10  ;;  %v108_v16 = vld [vmem:[#allocation6 + $0x80] sm:$0xff]  ;;  %v98_v53 = vld [vmem:[#allocation6 + $0x30] sm:$0xff] }
  0x3c   :  { %v113_v13 = vld [vmem:[#allocation6 + $0xa8] sm:$0xff]  ;;  %1127 = vmatpush1.bf16.msra.mxu0 %v1126_v8  ;;  %1228 = vmatpush1.bf16.msra.mxu1 %v1126_v8  ;;  %v112_v17 = vld [vmem:[#allocation6 + $0xa0] sm:$0xff]  ;;  %v103_v54 = vld [vmem:[#allocation6 + $0x58] sm:$0xff]  ;;  %v1158_v58 = vpack.c.bf16 %v98_v53, %v94_v52  ;;  %p1446_p13 = por %p1445_p12, %p1444_p11 }
  0x3d   :  { %1129 = vmatprep.subr.bf16.mxu0 %v1128_v9  ;;  %1221 = vmatprep.subr.bf16.mxu1 %v1128_v9  ;;  %v1132_v15 = vpack.c.bf16 %v113_v13, %v109_v12  ;;  %v117_v18 = vld [vmem:[#allocation6 + $0xc8] sm:$0xff]  ;;  %v1134_v20 = vpack.c.bf16 %v112_v17, %v108_v16  ;;  %v116_v22 = vld [vmem:[#allocation6 + $0xc0] sm:$0xff]  ;;  %v107_v55 = vld [vmem:[#allocation6 + $0x78] sm:$0xff] }
  0x3e   :  { %v121_v19 = vld [vmem:[#allocation6 + $0xe8] sm:$0xff]  ;;  %v120_v23 = vld [vmem:[#allocation6 + $0xe0] sm:$0xff]  ;;  %v1160_v59 = vpack.c.bf16 %v107_v55, %v103_v54  ;;  %v102_v60 = vld [vmem:[#allocation6 + $0x50] sm:$0xff]  ;;  %p1447_p0 = pnand %p1446_p13, %p1440_p10 }
  0x3f   :  { %v1136_v21 = vpack.c.bf16 %v121_v19, %v117_v18  ;;  %v125_v24 = vld [vmem:[#allocation6 + $0x108] sm:$0xff]  ;;  %v1138_v26 = vpack.c.bf16 %v120_v23, %v116_v22  ;;  %v124_v28 = vld [vmem:[#allocation6 + $0x100] sm:$0xff]  ;;  %v106_v61 = vld [vmem:[#allocation6 + $0x70] sm:$0xff] }
  0x40   :  { %1131 = vmatpush1.bf16.msra.mxu0 %v1130_v14  ;;  %1229 = vmatpush1.bf16.msra.mxu1 %v1130_v14  ;;  %v129_v25 = vld [vmem:[#allocation6 + $0x128] sm:$0xff]  ;;  %v128_v29 = vld [vmem:[#allocation6 + $0x120] sm:$0xff]  ;;  %v111_v62 = vld [vmem:[#allocation6 + $0x98] sm:$0xff]  ;;  %v1162_v3 = vpack.c.bf16 %v106_v61, %v102_v60 }
  0x41   :  { %1133 = vmatprep.subr.bf16.mxu0 %v1132_v15  ;;  %1222 = vmatprep.subr.bf16.mxu1 %v1132_v15  ;;  %v1140_v27 = vpack.c.bf16 %v129_v25, %v125_v24  ;;  %v133_v30 = vld [vmem:[#allocation6 + $0x148] sm:$0xff]  ;;  %v1142_v32 = vpack.c.bf16 %v128_v29, %v124_v28  ;;  %v132_v34 = vld [vmem:[#allocation6 + $0x140] sm:$0xff]  ;;  %v115_v63 = vld [vmem:[#allocation6 + $0xb8] sm:$0xff] }
  0x42   :  { %v137_v31 = vld [vmem:[#allocation6 + $0x168] sm:$0xff]  ;;  %v136_v35 = vld [vmem:[#allocation6 + $0x160] sm:$0xff]  ;;  %v1164_v4 = vpack.c.bf16 %v115_v63, %v111_v62  ;;  %v110_v5 = vld [vmem:[#allocation6 + $0x90] sm:$0xff] }
  0x43   :  { %v1144_v33 = vpack.c.bf16 %v137_v31, %v133_v30  ;;  %v141_v36 = vld [vmem:[#allocation6 + $0x188] sm:$0xff]  ;;  %v1146_v38 = vpack.c.bf16 %v136_v35, %v132_v34  ;;  %v140_v40 = vld [vmem:[#allocation6 + $0x180] sm:$0xff]  ;;  %v114_v6 = vld [vmem:[#allocation6 + $0xb0] sm:$0xff] }
  0x44   :  { %1135 = vmatpush1.bf16.msra.mxu0 %v1134_v20  ;;  %1230 = vmatpush1.bf16.msra.mxu1 %v1134_v20  ;;  %v145_v37 = vld [vmem:[#allocation6 + $0x1a8] sm:$0xff]  ;;  %v144_v41 = vld [vmem:[#allocation6 + $0x1a0] sm:$0xff]  ;;  %v119_v7 = vld [vmem:[#allocation6 + $0xd8] sm:$0xff]  ;;  %v1166_v11 = vpack.c.bf16 %v114_v6, %v110_v5 }
  0x45   :  { %1137 = vmatprep.subr.bf16.mxu0 %v1136_v21  ;;  %1223 = vmatprep.subr.bf16.mxu1 %v1136_v21  ;;  %v1148_v39 = vpack.c.bf16 %v145_v37, %v141_v36  ;;  %v149_v42 = vld [vmem:[#allocation6 + $0x1c8] sm:$0xff]  ;;  %v1150_v44 = vpack.c.bf16 %v144_v41, %v140_v40  ;;  %v148_v46 = vld [vmem:[#allocation6 + $0x1c0] sm:$0xff]  ;;  %v123_v8 = vld [vmem:[#allocation6 + $0xf8] sm:$0xff] }
  0x46   :  { %v153_v43 = vld [vmem:[#allocation6 + $0x1e8] sm:$0xff]  ;;  %v152_v47 = vld [vmem:[#allocation6 + $0x1e0] sm:$0xff]  ;;  %v1555_v9 = vld [vmem:[#allocation3 + $0x10] sm:$0xff]  ;;  %v1168_v12 = vpack.c.bf16 %v123_v8, %v119_v7 }
  0x47   :  { %v1152_v45 = vpack.c.bf16 %v153_v43, %v149_v42  ;;  %v1154_v50 = vpack.c.bf16 %v152_v47, %v148_v46  ;;  %v1540_v56 = vld [vmem:[#allocation3] sm:$0xff]  ;;  %v1547_v1 = vld [vmem:[#allocation3 + $0x8] sm:$0xff]  ;;  %v1557_v10 = vld [vmem:[#allocation3 + $0x50] sm:$0xff] }
  0x48   :  { %1139 = vmatpush1.bf16.msra.mxu0 %v1138_v26  ;;  %1231 = vmatpush1.bf16.msra.mxu1 %v1138_v26  ;;  %v1542_v57 = vld [vmem:[#allocation3 + $0x40] sm:$0xff]  ;;  %v1549_v2 = vld [vmem:[#allocation3 + $0x48] sm:$0xff]  ;;  %v118_v13 = vld [vmem:[#allocation6 + $0xd0] sm:$0xff] }
  0x49   :  { %1141 = vmatprep.subr.bf16.mxu0 %v1140_v27  ;;  %1224 = vmatprep.subr.bf16.mxu1 %v1140_v27  ;;  %v122_v14 = vld [vmem:[#allocation6 + $0xf0] sm:$0xff]  ;;  %v127_v15 = vld [vmem:[#allocation6 + $0x118] sm:$0xff]  ;;  %v80_v25 = vld [vmem:[#allocation3 + $0x20] sm:$0xff] }
  0x4a   :  { %v131_v16 = vld [vmem:[#allocation6 + $0x138] sm:$0xff]  ;;  %v1170_v19 = vpack.c.bf16 %v122_v14, %v118_v13  ;;  %v126_v21 = vld [vmem:[#allocation6 + $0x110] sm:$0xff]  ;;  %v1571_v26 = vld [vmem:[#allocation3 + $0x60] sm:$0xff] }
  0x4b   :  { %v1563_v17 = vld [vmem:[#allocation3 + $0x18] sm:$0xff]  ;;  %v1172_v20 = vpack.c.bf16 %v131_v16, %v127_v15  ;;  %v130_v22 = vld [vmem:[#allocation6 + $0x130] sm:$0xff]  ;;  %v89_v34 = vld [vmem:[#allocation3 + $0x68] sm:$0xff] }
  0x4c   :  { %1143 = vmatpush1.bf16.msra.mxu0 %v1142_v32  ;;  %1232 = vmatpush1.bf16.msra.mxu1 %v1142_v32  ;;  %v1565_v18 = vld [vmem:[#allocation3 + $0x58] sm:$0xff]  ;;  %v1174_v27 = vpack.c.bf16 %v130_v22, %v126_v21  ;;  %v134_v29 = vld [vmem:[#allocation6 + $0x150] sm:$0xff]  ;;  %v750_v53 = vld [vmem:[#allocation8] sm:$0xff] }
  0x4d   :  { %1145 = vmatprep.subr.bf16.mxu0 %v1144_v33  ;;  %1225 = vmatprep.subr.bf16.mxu1 %v1144_v33  ;;  %v135_v23 = vld [vmem:[#allocation6 + $0x158] sm:$0xff]  ;;  %v138_v30 = vld [vmem:[#allocation6 + $0x170] sm:$0xff]  ;;  %v81_v33 = vld [vmem:[#allocation3 + $0x28] sm:$0xff] }
  0x4e   :  { %v139_v24 = vld [vmem:[#allocation6 + $0x178] sm:$0xff]  ;;  %v1178_v35 = vpack.c.bf16 %v138_v30, %v134_v29  ;;  %v142_v37 = vld [vmem:[#allocation6 + $0x190] sm:$0xff]  ;;  %v751_v54 = vld [vmem:[#allocation8 + $0x8] sm:$0xff] }
  0x4f   :  { %v1176_v28 = vpack.c.bf16 %v139_v24, %v135_v23  ;;  %v143_v31 = vld [vmem:[#allocation6 + $0x198] sm:$0xff]  ;;  %v82_v41 = vld [vmem:[#allocation3 + $0x30] sm:$0xff]  ;;  %v1190_v55 = vpack.c.bf16 %v751_v54, %v750_v53  ;;  %v770_v62 = vld [vmem:[#allocation8 + $0xa0] sm:$0xff] }
  0x50   :  { %1147 = vmatpush1.bf16.msra.mxu0 %v1146_v38  ;;  %1233 = vmatpush1.bf16.msra.mxu1 %v1146_v38  ;;  %v147_v32 = vld [vmem:[#allocation6 + $0x1b8] sm:$0xff]  ;;  %v146_v38 = vld [vmem:[#allocation6 + $0x1b0] sm:$0xff]  ;;  %v771_v63 = vld [vmem:[#allocation8 + $0xa8] sm:$0xff] }
  0x51   :  { %1149 = vmatprep.subr.bf16.mxu0 %v1148_v39  ;;  %1226 = vmatprep.subr.bf16.mxu1 %v1148_v39  ;;  %v1180_v36 = vpack.c.bf16 %v147_v32, %v143_v31  ;;  %v151_v39 = vld [vmem:[#allocation6 + $0x1d8] sm:$0xff]  ;;  %v90_v42 = vld [vmem:[#allocation3 + $0x70] sm:$0xff]  ;;  %v1182_v43 = vpack.c.bf16 %v146_v38, %v142_v37  ;;  %v758_v13 = vld [vmem:[#allocation8 + $0x40] sm:$0xff] }
  0x52   :  { %v155_v40 = vld [vmem:[#allocation6 + $0x1f8] sm:$0xff]  ;;  %v154_v46 = vld [vmem:[#allocation6 + $0x1f0] sm:$0xff]  ;;  %v759_v14 = vld [vmem:[#allocation8 + $0x48] sm:$0xff] }
  0x53   :  { %v83_v47 = vld [vmem:[#allocation3 + $0x38] sm:$0xff]  ;;  %v756_v7 = vld [vmem:[#allocation8 + $0x30] sm:$0xff]  ;;  %v1206_v15 = vpack.c.bf16 %v759_v14, %v758_v13  ;;  %v778_v22 = vld [vmem:[#allocation8 + $0xe0] sm:$0xff] }
  0x54   :  { %1151 = vmatpush1.bf16.msra.mxu0 %v1150_v44  ;;  %1234 = vmatpush1.bf16.msra.mxu1 %v1150_v44  ;;  %v1184_v44 = vpack.c.bf16 %v155_v40, %v151_v39  ;;  %v91_v48 = vld [vmem:[#allocation3 + $0x78] sm:$0xff]  ;;  %v776_v16 = vld [vmem:[#allocation8 + $0xd0] sm:$0xff]  ;;  %v779_v23 = vld [vmem:[#allocation8 + $0xe8] sm:$0xff] }
  0x55   :  { %1153 = vmatprep.subr.bf16.mxu0 %v1152_v45  ;;  %1227 = vmatprep.subr.bf16.mxu1 %v1152_v45  ;;  %v150_v45 = vld [vmem:[#allocation6 + $0x1d0] sm:$0xff]  ;;  %v753_v60 = vld [vmem:[#allocation8 + $0x18] sm:$0xff]  ;;  %v1212_v24 = vpack.c.bf16 %v779_v23, %v778_v22 }
  0x56   :  { %v1186_v49 = vpack.c.bf16 %v154_v46, %v150_v45  ;;  %v773_v5 = vld [vmem:[#allocation8 + $0xb8] sm:$0xff]  ;;  %v764_v31 = vld [vmem:[#allocation8 + $0x70] sm:$0xff] }
  0x57   :  { %v757_v8 = vld [vmem:[#allocation8 + $0x38] sm:$0xff] }
  0x58   :  { %1155 = vmatpush1.bf16.msra.mxu0 %v1154_v50  ;;  %1235 = vmatpush1.bf16.msra.mxu1 %v1154_v50  ;;  %v766_v50 = vld [vmem:[#allocation8 + $0x80] sm:$0xff]  ;;  %v781_v29 = vld [vmem:[#allocation8 + $0xf8] sm:$0xff] }
  0x59   :  { %1157 = vmatprep.subr.bf16.mxu1 %v1156_v51  ;;  %v767_v51 = vld [vmem:[#allocation8 + $0x88] sm:$0xff]  ;;  %v765_v32 = vld [vmem:[#allocation8 + $0x78] sm:$0xff] }
  0x5a   :  { %v1188_v52 = vpack.c.bf16 %v767_v51, %v766_v50 }
  0x5b   :  { %221 = vmatmul.mubr.f32.vlgmr.msra.gmra.mrb[0].mxu0 %v1540_v56  ;;  %269 = vmatmul.mubr.f32.vlgmr.msra.gmra.mrb[0].mxu1 %v1542_v57 }
  0x5c   :  { %1159 = vmatpush1.bf16.msra.mxu1 %v1158_v58  ;;  %226 = vmatprep.mubr.f32.mxu0 %v1474_v0 }
  0x5d   :  { %274 = vmatprep.mubr.f32.mxu1 %v1474_v0  ;;  %1161 = vmatprep.subr.bf16.mxu1 %v1160_v59  ;;  %v752_v59 = vld [vmem:[#allocation8 + $0x10] sm:$0xff] }
  0x5e   :  { %1189 = vmatprep.subr.bf16.mxu0 %v1188_v52  ;;  %v1194_v61 = vpack.c.bf16 %v753_v60, %v752_v59 }
  0x5f   :  { %227 = vmatmul.mubr.f32.gmra.mrb[2].mxu0 %v1547_v1  ;;  %275 = vmatmul.mubr.f32.gmra.mrb[2].mxu1 %v1549_v2 }
  0x60   :  { %1163 = vmatpush1.bf16.msra.mxu1 %v1162_v3  ;;  %232 = vmatprep.mubr.f32.mxu0 %v1474_v0  ;;  %v755_v3 = vld [vmem:[#allocation8 + $0x28] sm:$0xff] }
  0x61   :  { %280 = vmatprep.mubr.f32.mxu1 %v1474_v0  ;;  %1165 = vmatprep.subr.bf16.mxu1 %v1164_v4 }
  0x62   :  { %1191 = vmatpush3.bf16.msra.mxu0 %v1190_v55 }
  0x63   :  { %233 = vmatmul.mubr.f32.gmra.mrb[4].mxu0 %v1555_v9  ;;  %281 = vmatmul.mubr.f32.gmra.mrb[4].mxu1 %v1557_v10 }
  0x64   :  { %1167 = vmatpush1.bf16.msra.mxu1 %v1166_v11  ;;  %238 = vmatprep.mubr.f32.mxu0 %v1474_v0  ;;  %v775_v11 = vld [vmem:[#allocation8 + $0xc8] sm:$0xff] }
  0x65   :  { %286 = vmatprep.mubr.f32.mxu1 %v1474_v0  ;;  %1169 = vmatprep.subr.bf16.mxu1 %v1168_v12 }
  0x67   :  { %239 = vmatmul.mubr.f32.gmra.mrb[6].mxu0 %v1563_v17  ;;  %287 = vmatmul.mubr.f32.gmra.mrb[6].mxu1 %v1565_v18 }
  0x68   :  { %1171 = vmatpush1.bf16.msra.mxu1 %v1170_v19  ;;  %244 = vmatprep.mubr.f32.mxu0 %v1474_v0  ;;  %v760_v19 = vld [vmem:[#allocation8 + $0x50] sm:$0xff] }
  0x69   :  { %292 = vmatprep.mubr.f32.mxu1 %v1474_v0  ;;  %1173 = vmatprep.subr.bf16.mxu1 %v1172_v20  ;;  %v761_v20 = vld [vmem:[#allocation8 + $0x58] sm:$0xff] }
  0x6a   :  { %v1210_v21 = vpack.c.bf16 %v761_v20, %v760_v19 }
  0x6b   :  { %245 = vmatmul.mubr.f32.gmra.mrb[8].mxu0 %v80_v25  ;;  %293 = vmatmul.mubr.f32.gmra.mrb[8].mxu1 %v1571_v26 }
  0x6c   :  { %1175 = vmatpush1.bf16.msra.mxu1 %v1174_v27  ;;  %250 = vmatprep.mubr.f32.mxu0 %v1474_v0 }
  0x6d   :  { %298 = vmatprep.mubr.f32.mxu1 %v1474_v0  ;;  %1177 = vmatprep.subr.bf16.mxu1 %v1176_v28  ;;  %v780_v28 = vld [vmem:[#allocation8 + $0xf0] sm:$0xff] }
  0x6e   :  { %v1216_v30 = vpack.c.bf16 %v781_v29, %v780_v28 }
  0x6f   :  { %251 = vmatmul.mubr.f32.gmra.mrb[10].mxu0 %v81_v33  ;;  %299 = vmatmul.mubr.f32.gmra.mrb[10].mxu1 %v89_v34 }
  0x70   :  { %1179 = vmatpush1.bf16.msra.mxu1 %v1178_v35  ;;  %256 = vmatprep.mubr.f32.mxu0 %v1474_v0 }
  0x71   :  { %304 = vmatprep.mubr.f32.mxu1 %v1474_v0  ;;  %1181 = vmatprep.subr.bf16.mxu1 %v1180_v36 }
  0x73   :  { %257 = vmatmul.mubr.f32.gmra.mrb[12].mxu0 %v82_v41  ;;  %305 = vmatmul.mubr.f32.gmra.mrb[12].mxu1 %v90_v42 }
  0x74   :  { %1183 = vmatpush1.bf16.msra.mxu1 %v1182_v43  ;;  %262 = vmatprep.mubr.f32.mxu0 %v1474_v0 }
  0x75   :  { %310 = vmatprep.mubr.f32.mxu1 %v1474_v0  ;;  %1185 = vmatprep.subr.bf16.mxu1 %v1184_v44 }
  0x77   :  { %263 = vmatmul.mubr.f32.gmra.mrb[14].mxu0 %v83_v47  ;;  %311 = vmatmul.mubr.f32.gmra.mrb[14].mxu1 %v91_v48 }
  0x78   :  { %1187 = vmatpush1.bf16.msra.mxu1 %v1186_v49  ;;  %381 = vmatprep.mubr.f32.mxu1 %v1474_v0 }
  0x7b   :  { %382 = vmatmul.mubr.f32.vlgmr.msra.gmra.mrb[16].mxu1 %v1540_v56  ;;  %v768_v56 = vld [vmem:[#allocation8 + $0x90] sm:$0xff] }
  0x7c   :  { %387 = vmatprep.mubr.f32.mxu1 %v1474_v0 }
  0x7f   :  { %388 = vmatmul.mubr.f32.gmra.mrb[18].mxu1 %v1547_v1  ;;  %v1196_v1 = vpack.c.bf16 %v771_v63, %v770_v62 }
  0x80   :  { %393 = vmatprep.mubr.f32.mxu1 %v1474_v0 }
  0x83   :  { %394 = vmatmul.mubr.f32.gmra.mrb[20].mxu1 %v1555_v9  ;;  %v1202_v9 = vpack.c.bf16 %v757_v8, %v756_v7 }
  0x84   :  { %399 = vmatprep.mubr.f32.mxu1 %v1474_v0 }
  0x87   :  { %400 = vmatmul.mubr.f32.gmra.mrb[22].mxu1 %v1563_v17  ;;  %v777_v17 = vld [vmem:[#allocation8 + $0xd8] sm:$0xff] }
  0x88   :  { %405 = vmatprep.mubr.f32.mxu1 %v1474_v0 }
  0x8b   :  { %406 = vmatmul.mubr.f32.gmra.mrb[24].mxu1 %v80_v25  ;;  %v762_v25 = vld [vmem:[#allocation8 + $0x60] sm:$0xff] }
  0x8c   :  { %411 = vmatprep.mubr.f32.mxu1 %v1474_v0 }
  0x8f   :  { %412 = vmatmul.mubr.f32.gmra.mrb[26].mxu1 %v81_v33  ;;  %v1218_v33 = vpack.c.bf16 %v765_v32, %v764_v31 }
  0x90   :  { %417 = vmatprep.mubr.f32.mxu1 %v1474_v0 }
  0x93   :  { %418 = vmatmul.mubr.f32.gmra.mrb[28].mxu1 %v82_v41 }
  0x94   :  { %423 = vmatprep.mubr.f32.mxu1 %v1474_v0 }
  0x97   :  { %424 = vmatmul.mubr.f32.gmra.mrb[30].mxu1 %v83_v47 }
  0x98   :  { %429 = vmatprep.mubr.f32.mxu1 %v1474_v0 }
  0x9b   :  { %430 = vmatmul.mubr.f32.gmra.mrb[32].mxu1 %v1542_v57  ;;  %v769_v57 = vld [vmem:[#allocation8 + $0x98] sm:$0xff] }
  0x9c   :  { %435 = vmatprep.mubr.f32.mxu1 %v1474_v0  ;;  %v1192_v58 = vpack.c.bf16 %v769_v57, %v768_v56 }
  0x9e   :  { %1193 = vmatprep.subr.bf16.mxu0 %v1192_v58 }
  0x9f   :  { %436 = vmatmul.mubr.f32.gmra.mrb[34].mxu1 %v1549_v2  ;;  %1195 = vmatpush3.bf16.msra.mxu0 %v1194_v61  ;;  %v754_v2 = vld [vmem:[#allocation8 + $0x20] sm:$0xff] }
  0xa0   :  { %441 = vmatprep.mubr.f32.mxu1 %v1474_v0  ;;  %v1198_v4 = vpack.c.bf16 %v755_v3, %v754_v2  ;;  %1197 = vmatprep.subr.bf16.mxu0 %v1196_v1 }
  0xa3   :  { %442 = vmatmul.mubr.f32.gmra.mrb[36].mxu1 %v1557_v10  ;;  %1199 = vmatpush3.bf16.msra.mxu0 %v1198_v4  ;;  %v774_v10 = vld [vmem:[#allocation8 + $0xc0] sm:$0xff] }
  0xa4   :  { %447 = vmatprep.mubr.f32.mxu1 %v1474_v0  ;;  %v1204_v12 = vpack.c.bf16 %v775_v11, %v774_v10 }
  0xa7   :  { %448 = vmatmul.mubr.f32.gmra.mrb[38].mxu1 %v1565_v18  ;;  %v1208_v18 = vpack.c.bf16 %v777_v17, %v776_v16 }
  0xa8   :  { %453 = vmatprep.mubr.f32.mxu1 %v1474_v0 }
  0xab   :  { %454 = vmatmul.mubr.f32.gmra.mrb[40].mxu1 %v1571_v26  ;;  %v763_v26 = vld [vmem:[#allocation8 + $0x68] sm:$0xff] }
  0xac   :  { %459 = vmatprep.mubr.f32.mxu1 %v1474_v0  ;;  %v1214_v27 = vpack.c.bf16 %v763_v26, %v762_v25 }
  0xaf   :  { %460 = vmatmul.mubr.f32.gmra.mrb[42].mxu1 %v89_v34 }
  0xb0   :  { %465 = vmatprep.mubr.f32.mxu1 %v1474_v0 }
  0xb3   :  { %466 = vmatmul.mubr.f32.gmra.mrb[44].mxu1 %v90_v42 }
  0xb4   :  { %471 = vmatprep.mubr.f32.mxu1 %v1474_v0  ;;  %v772_v0 = vld [vmem:[#allocation8 + $0xb0] sm:$0xff] }
  0xb5   :  { %v1200_v6 = vpack.c.bf16 %v773_v5, %v772_v0 }
  0xb7   :  { %472 = vmatmul.mubr.f32.gmra.mrb[46].mxu1 %v91_v48  ;;  %1201 = vmatprep.subr.bf16.mxu0 %v1200_v6 }
  0xb8   :  { %1203 = vmatpush3.bf16.msra.mxu0 %v1202_v9 }
  0xb9   :  { %1205 = vmatprep.subr.bf16.mxu0 %v1204_v12 }
  0xbc   :  { %1207 = vmatpush3.bf16.msra.mxu0 %v1206_v15 }
  0xbd   :  { %1209 = vmatprep.subr.bf16.mxu0 %v1208_v18 }
  0xc0   :  { %1211 = vmatpush3.bf16.msra.mxu0 %v1210_v21 }
  0xc1   :  { %1213 = vmatprep.subr.bf16.mxu0 %v1212_v24 }
  0xc4   :  { %1215 = vmatpush3.bf16.msra.mxu0 %v1214_v27 }
  0xc5   :  { %1217 = vmatprep.subr.bf16.mxu0 %v1216_v30 }
  0xc8   :  { %1219 = vmatpush3.bf16.msra.mxu0 %v1218_v33 }
 0x12e   :  { %v1606_v34 = vpop.f32.mrb[0].mxu0  ;;  %v1608_v35 = vpop.f32.mrb[0].mxu1 }
 0x12f   :  { %v1012_v36 = vmul.f32 -1.442695, %v1606_v34  ;;  %v1611_v37 = vpop.f32.mrb[1].mxu0  ;;  %v1613_v38 = vpop.f32.mrb[1].mxu1  ;;  %v1028_v52 = vmul.f32 -1.442695, %v1608_v35 }
 0x130   :  { %v1013_v39 = vmul.f32 -1.442695, %v1611_v37  ;;  %v1029_v56 = vmul.f32 -1.442695, %v1613_v38 }
 0x131   :  { %1245 = vpow2.f32 %v1012_v36 }
 0x132   :  { %v1616_v40 = vpop.f32.mrb[2].mxu0  ;;  %v1618_v41 = vpop.f32.mrb[2].mxu1  ;;  %1247 = vpow2.f32 %v1013_v39 }
 0x133   :  { %v1014_v42 = vmul.f32 -1.442695, %v1616_v40  ;;  %v1621_v43 = vpop.f32.mrb[3].mxu0  ;;  %v1623_v44 = vpop.f32.mrb[3].mxu1  ;;  %v1030_v63 = vmul.f32 -1.442695, %v1618_v41 }
 0x134   :  { %v1015_v45 = vmul.f32 -1.442695, %v1621_v43  ;;  %v1031_v4 = vmul.f32 -1.442695, %v1623_v44 }
 0x135   :  { %1249 = vpow2.f32 %v1014_v42 }
 0x136   :  { %v1626_v46 = vpop.f32.mrb[4].mxu0  ;;  %v1628_v47 = vpop.f32.mrb[4].mxu1  ;;  %1251 = vpow2.f32 %v1015_v45 }
 0x137   :  { %v1016_v48 = vmul.f32 -1.442695, %v1626_v46  ;;  %v1631_v49 = vpop.f32.mrb[5].mxu0  ;;  %v1633_v50 = vpop.f32.mrb[5].mxu1  ;;  %v1032_v9 = vmul.f32 -1.442695, %v1628_v47 }
 0x138   :  { %v1017_v51 = vmul.f32 -1.442695, %v1631_v49  ;;  %v1033_v13 = vmul.f32 -1.442695, %v1633_v50 }
 0x139   :  { %1253 = vpow2.f32 %v1016_v48 }
 0x13a   :  { %v1637_v53 = vpop.f32.mrb[6].mxu0  ;;  %v1639_v54 = vpop.f32.mrb[6].mxu1  ;;  %1255 = vpow2.f32 %v1017_v51 }
 0x13b   :  { %v1246_v55 = vpop.eup %1245  ;;  %v1018_v57 = vmul.f32 -1.442695, %v1637_v53  ;;  %v1643_v58 = vpop.f32.mrb[7].mxu0 }
 0x13c   :  { %v1645_v59 = vpop.f32.mrb[7].mxu1  ;;  %v574_v60 = vadd.f32 1.0, %v1246_v55  ;;  %v1248_v61 = vpop.eup %1247  ;;  %v1019_v25 = vmul.f32 -1.442695, %v1643_v58 }
 0x13d   :  { %1257 = vpow2.f32 %v1018_v57  ;;  %v575_v62 = vadd.f32 1.0, %v1248_v61 }
 0x13e   :  { %1259 = vpow2.f32 %v1028_v52  ;;  %v1648_v1 = vpop.f32.mrb[8].mxu0  ;;  %v1650_v2 = vpop.f32.mrb[8].mxu1 }
 0x13f   :  { %v1250_v3 = vpop.eup %1249  ;;  %1261 = vpow2.f32 %v1029_v56  ;;  %v1653_v0 = vpop.f32.mrb[9].mxu0  ;;  %v1020_v29 = vmul.f32 -1.442695, %v1648_v1 }
 0x140   :  { %1263 = vrcp.f32 %v574_v60  ;;  %v576_v5 = vadd.f32 1.0, %v1250_v3  ;;  %v1655_v6 = vpop.f32.mrb[9].mxu1  ;;  %v1252_v7 = vpop.eup %1251  ;;  %v1021_v45 = vmul.f32 -1.442695, %v1653_v0 }
 0x141   :  { %1265 = vrcp.f32 %v575_v62  ;;  %v577_v8 = vadd.f32 1.0, %v1252_v7 }
 0x142   :  { %1267 = vpow2.f32 %v1030_v63  ;;  %v1658_v10 = vpop.f32.mrb[10].mxu0  ;;  %v1660_v11 = vpop.f32.mrb[10].mxu1 }
 0x143   :  { %v1254_v12 = vpop.eup %1253  ;;  %1269 = vpow2.f32 %v1031_v4  ;;  %v1663_v14 = vpop.f32.mrb[11].mxu0  ;;  %v1022_v57 = vmul.f32 -1.442695, %v1658_v10 }
 0x144   :  { %1271 = vrcp.f32 %v576_v5  ;;  %v578_v15 = vadd.f32 1.0, %v1254_v12  ;;  %v1665_v16 = vpop.f32.mrb[11].mxu1  ;;  %v1256_v17 = vpop.eup %1255  ;;  %v1023_v5 = vmul.f32 -1.442695, %v1663_v14 }
 0x145   :  { %1273 = vrcp.f32 %v577_v8  ;;  %v579_v18 = vadd.f32 1.0, %v1256_v17 }
 0x146   :  { %1275 = vpow2.f32 %v1032_v9  ;;  %v1667_v19 = vpop.f32.mrb[12].mxu0  ;;  %v1669_v20 = vpop.f32.mrb[12].mxu1 }
 0x147   :  { %v1258_v21 = vpop.eup %1257  ;;  %1277 = vpow2.f32 %v1033_v13  ;;  %v1671_v22 = vpop.f32.mrb[13].mxu0  ;;  %v1024_v13 = vmul.f32 -1.442695, %v1667_v19 }
 0x148   :  { %v1260_v23 = vpop.eup %1259  ;;  %1279 = vrcp.f32 %v578_v15  ;;  %v580_v24 = vadd.f32 1.0, %v1258_v21  ;;  %v1674_v26 = vpop.f32.mrb[13].mxu1 }
 0x149   :  { %v1262_v27 = vpop.eup %1261  ;;  %1281 = vrcp.f32 %v579_v18  ;;  %v590_v33 = vadd.f32 1.0, %v1260_v23 }
 0x14a   :  { %v1264_v28 = vpop.eup %1263  ;;  %v1677_v30 = vpop.f32.mrb[14].mxu0  ;;  %1283 = vrcp.f32 %v580_v24  ;;  %v591_v52 = vadd.f32 1.0, %v1262_v27  ;;  %v1034_v24 = vmul.f32 -1.442695, %v1639_v54 }
 0x14b   :  { %v1679_v31 = vpop.f32.mrb[14].mxu1  ;;  %v1266_v32 = vpop.eup %1265  ;;  %1285 = vpow2.f32 %v1019_v25  ;;  %v670_v51 = vmul.f32 %v1264_v28, %v1606_v34 }
 0x14c   :  { %v1681_v36 = vpop.f32.mrb[15].mxu0  ;;  %v1683_v39 = vpop.f32.mrb[15].mxu1  ;;  %v671_v56 = vmul.f32 %v1266_v32, %v1611_v37  ;;  %1287 = vpow2.f32 %v1020_v29 }
 0x14d   :  { %v1268_v42 = vpop.eup %1267  ;;  %1289 = vrcp.f32 %v590_v33 }
 0x14e   :  { %v1270_v48 = vpop.eup %1269  ;;  %v383_v60 = vpop.f32.mrb[16].mxu1  ;;  %v592_v62 = vadd.f32 1.0, %v1268_v42  ;;  %1291 = vpow2.f32 %v1021_v45 }
 0x14f   :  { %v1272_v55 = vpop.eup %1271  ;;  %v702_v63 = vmul.f32 %v670_v51, %v383_v60  ;;  %v385_v3 = vpop.f32.mrb[17].mxu1  ;;  %1293 = vrcp.f32 %v591_v52  ;;  %v593_v9 = vadd.f32 1.0, %v1270_v48  ;;  %v1035_v51 = vmul.f32 -1.442695, %v1645_v59 }
 0x150   :  { %v1274_v61 = vpop.eup %1273  ;;  %v703_v7 = vmul.f32 %v671_v56, %v385_v3  ;;  %v672_v34 = vmul.f32 %v1272_v55, %v1616_v40  ;;  %1295 = vpow2.f32 %v1022_v57  ;;  %v1036_v57 = vmul.f32 -1.442695, %v1650_v2 }
 0x151   :  { %v1276_v4 = vpop.eup %1275  ;;  %v673_v12 = vmul.f32 %v1274_v61, %v1621_v43  ;;  %1297 = vrcp.f32 %v592_v62 }
 0x152   :  { %v1278_v8 = vpop.eup %1277  ;;  %v389_v15 = vpop.f32.mrb[18].mxu1  ;;  %846 = vmatprep.mubr.f32.mxu0 %v703_v7  ;;  %v594_v18 = vadd.f32 1.0, %v1276_v4  ;;  %1299 = vpow2.f32 %v1023_v5  ;;  %v1037_v5 = vmul.f32 -1.442695, %v1655_v6 }
 0x153   :  { %v1280_v37 = vpop.eup %1279  ;;  %v704_v21 = vmul.f32 %v672_v34, %v389_v15  ;;  %v391_v23 = vpop.f32.mrb[19].mxu1  ;;  %847 = vmatmul.mubr.f32.vlgmr.msra.gmra.mrb[16].mxu0 %v702_v63  ;;  %1301 = vrcp.f32 %v593_v9  ;;  %v595_v29 = vadd.f32 1.0, %v1278_v8  ;;  %v1038_v34 = vmul.f32 -1.442695, %v1660_v11 }
 0x154   :  { %v1282_v17 = vpop.eup %1281  ;;  %v705_v25 = vmul.f32 %v673_v12, %v391_v23  ;;  %v674_v27 = vmul.f32 %v1280_v37, %v1626_v46  ;;  %1303 = vpow2.f32 %v1024_v13  ;;  %v1025_v23 = vmul.f32 -1.442695, %v1671_v22 }
 0x155   :  { %v1284_v40 = vpop.eup %1283  ;;  %v675_v28 = vmul.f32 %v1282_v17, %v1631_v49  ;;  %1305 = vrcp.f32 %v594_v18  ;;  %v1039_v17 = vmul.f32 -1.442695, %v1665_v16 }
 0x156   :  { %v1286_v43 = vpop.eup %1285  ;;  %v395_v32 = vpop.f32.mrb[20].mxu1  ;;  %851 = vmatprep.mubr.f32.mxu0 %v705_v25  ;;  %1307 = vpow2.f32 %v1034_v24  ;;  %v676_v46 = vmul.f32 %v1284_v40, %v1637_v53  ;;  %v1040_v25 = vmul.f32 -1.442695, %v1669_v20 }
 0x157   :  { %v581_v33 = vadd.f32 1.0, %v1286_v43  ;;  %v706_v42 = vmul.f32 %v674_v27, %v395_v32  ;;  %v397_v45 = vpop.f32.mrb[21].mxu1  ;;  %852 = vmatmul.mubr.f32.gmra.mrb[18].mxu0 %v704_v21  ;;  %v1288_v48 = vpop.eup %1287  ;;  %v1026_v43 = vmul.f32 -1.442695, %v1677_v30 }
 0x158   :  { %v707_v52 = vmul.f32 %v675_v28, %v397_v45  ;;  %v1697_v55 = vpop.eup %1289  ;;  %v582_v49 = vadd.f32 1.0, %v1288_v48  ;;  %v1027_v45 = vmul.f32 -1.442695, %v1681_v36 }
 0x159   :  { %1309 = vrcp.f32 %v581_v33  ;;  %v1292_v56 = vpop.eup %1291  ;;  %v1041_v33 = vmul.f32 -1.442695, %v1674_v26 }
 0x15a   :  { %1311 = vrcp.f32 %v595_v29  ;;  %v401_v60 = vpop.f32.mrb[22].mxu1  ;;  %856 = vmatprep.mubr.f32.mxu0 %v707_v52  ;;  %v1701_v61 = vpop.eup %1293  ;;  %v583_v62 = vadd.f32 1.0, %v1292_v56 }
 0x15b   :  { %1313 = vrcp.f32 %v582_v49  ;;  %v708_v63 = vmul.f32 %v676_v46, %v401_v60  ;;  %v403_v3 = vpop.f32.mrb[23].mxu1  ;;  %857 = vmatmul.mubr.f32.gmra.mrb[20].mxu0 %v706_v42  ;;  %v1296_v4 = vpop.eup %1295 }
 0x15c   :  { %1315 = vpow2.f32 %v1035_v51  ;;  %v1704_v53 = vpop.eup %1297  ;;  %v584_v7 = vadd.f32 1.0, %v1296_v4  ;;  %v1043_v4 = vmul.f32 -1.442695, %v1683_v39 }
 0x15d   :  { %1317 = vrcp.f32 %v583_v62  ;;  %v1300_v8 = vpop.eup %1299 }
 0x15e   :  { %1319 = vpow2.f32 %v1036_v57  ;;  %v407_v9 = vpop.f32.mrb[24].mxu1  ;;  %v1707_v37 = vpop.eup %1301  ;;  %v585_v12 = vadd.f32 1.0, %v1300_v8  ;;  %v1042_v57 = vmul.f32 -1.442695, %v1679_v31 }
 0x15f   :  { %1321 = vrcp.f32 %v584_v7  ;;  %v409_v13 = vpop.f32.mrb[25].mxu1  ;;  %v1304_v15 = vpop.eup %1303 }
 0x160   :  { %1323 = vpow2.f32 %v1037_v5  ;;  %v1710_v18 = vpop.eup %1305  ;;  %v586_v21 = vadd.f32 1.0, %v1304_v15 }
 0x161   :  { %1325 = vrcp.f32 %v585_v12  ;;  %v1308_v24 = vpop.eup %1307 }
 0x162   :  { %1327 = vpow2.f32 %v1038_v34  ;;  %v413_v40 = vpop.f32.mrb[26].mxu1  ;;  %v596_v51 = vadd.f32 1.0, %v1308_v24 }
 0x163   :  { %v1310_v27 = vpop.eup %1309  ;;  %1329 = vrcp.f32 %v586_v21  ;;  %v415_v28 = vpop.f32.mrb[27].mxu1 }
 0x164   :  { %v1715_v29 = vpop.eup %1311  ;;  %v677_v32 = vmul.f32 %v1310_v27, %v1643_v58  ;;  %1331 = vpow2.f32 %v1039_v17 }
 0x165   :  { %v1314_v42 = vpop.eup %1313  ;;  %1333 = vpow2.f32 %v1025_v23 }
 0x166   :  { %v1316_v48 = vpop.eup %1315  ;;  %v678_v52 = vmul.f32 %v1314_v42, %v1648_v1  ;;  %1335 = vpow2.f32 %v1040_v25  ;;  %v709_v46 = vmul.f32 %v677_v32, %v403_v3  ;;  %v419_v49 = vpop.f32.mrb[28].mxu1  ;;  %v687_v25 = vmul.f32 %v1701_v61, %v1613_v38 }
 0x167   :  { %v1318_v56 = vpop.eup %1317  ;;  %1337 = vpow2.f32 %v1026_v43  ;;  %v1722_v60 = vpop.f32.mrb[29].mxu1  ;;  %v597_v8 = vadd.f32 1.0, %v1316_v48  ;;  %v688_v38 = vmul.f32 %v1704_v53, %v1618_v41 }
 0x168   :  { %v1320_v58 = vpop.eup %1319  ;;  %v679_v62 = vmul.f32 %v1318_v56, %v1653_v0  ;;  %1339 = vpow2.f32 %v1041_v33  ;;  %v710_v5 = vmul.f32 %v678_v52, %v407_v9  ;;  %861 = vmatprep.mubr.f32.mxu0 %v709_v46 }
 0x169   :  { %v1322_v7 = vpop.eup %1321  ;;  %1341 = vpow2.f32 %v1027_v45  ;;  %862 = vmatmul.mubr.f32.gmra.mrb[22].mxu0 %v708_v63  ;;  %v598_v21 = vadd.f32 1.0, %v1320_v58  ;;  %v686_v63 = vmul.f32 %v1697_v55, %v1608_v35 }
 0x16a   :  { %v1324_v1 = vpop.eup %1323  ;;  %1343 = vrcp.f32 %v596_v51  ;;  %v680_v3 = vmul.f32 %v1322_v7, %v1658_v10  ;;  %v711_v34 = vmul.f32 %v679_v62, %v409_v13  ;;  %v1727_v12 = vpop.f32.mrb[30].mxu1  ;;  %v691_v7 = vmul.f32 %v1715_v29, %v1633_v50 }
 0x16b   :  { %v1326_v15 = vpop.eup %1325  ;;  %1345 = vpow2.f32 %v1042_v57  ;;  %v1729_v17 = vpop.f32.mrb[31].mxu1  ;;  %v599_v10 = vadd.f32 1.0, %v1324_v1 }
 0x16c   :  { %v1328_v0 = vpop.eup %1327  ;;  %v681_v9 = vmul.f32 %v1326_v15, %v1663_v14  ;;  %1347 = vpow2.f32 %v1043_v4  ;;  %v712_v23 = vmul.f32 %v680_v3, %v413_v40  ;;  %866 = vmatprep.mubr.f32.mxu0 %v711_v34 }
 0x16d   :  { %v1330_v24 = vpop.eup %1329  ;;  %1349 = vrcp.f32 %v597_v8  ;;  %867 = vmatmul.mubr.f32.gmra.mrb[24].mxu0 %v710_v5  ;;  %v600_v14 = vadd.f32 1.0, %v1328_v0  ;;  %v690_v5 = vmul.f32 %v1710_v18, %v1628_v47 }
 0x16e   :  { %v1332_v13 = vpop.eup %1331  ;;  %v682_v27 = vmul.f32 %v1330_v24, %v1667_v19  ;;  %v713_v43 = vmul.f32 %v681_v9, %v415_v28  ;;  %v431_v32 = vpop.f32.mrb[32].mxu1  ;;  %1351 = vrcp.f32 %v598_v21  ;;  %v689_v28 = vmul.f32 %v1707_v37, %v1623_v44 }
 0x16f   :  { %v1334_v33 = vpop.eup %1333  ;;  %v1737_v42 = vmul.f32 %v686_v63, %v431_v32  ;;  %v433_v40 = vpop.f32.mrb[33].mxu1  ;;  %1353 = vrcp.f32 %v599_v10  ;;  %v601_v19 = vadd.f32 1.0, %v1332_v13 }
 0x170   :  { %v1336_v45 = vpop.eup %1335  ;;  %v587_v48 = vadd.f32 1.0, %v1334_v33  ;;  %v1739_v35 = vmul.f32 %v682_v27, %v419_v49  ;;  %871 = vmatprep.mubr.f32.mxu0 %v713_v43  ;;  %v1741_v55 = vmul.f32 %v687_v25, %v433_v40 }
 0x171   :  { %v1338_v51 = vpop.eup %1337  ;;  %872 = vmatmul.mubr.f32.gmra.mrb[26].mxu0 %v712_v23  ;;  %v602_v62 = vadd.f32 1.0, %v1336_v45 }
 0x172   :  { %v1340_v61 = vpop.eup %1339  ;;  %1355 = vrcp.f32 %v587_v48  ;;  %v588_v52 = vadd.f32 1.0, %v1338_v51  ;;  %v437_v46 = vpop.f32.mrb[34].mxu1 }
 0x173   :  { %v1342_v56 = vpop.eup %1341  ;;  %1357 = vrcp.f32 %v600_v14  ;;  %v1747_v49 = vmul.f32 %v688_v38, %v437_v46  ;;  %v439_v57 = vpop.f32.mrb[35].mxu1  ;;  %v603_v44 = vadd.f32 1.0, %v1340_v61 }
 0x174   :  { %v1344_v58 = vpop.eup %1343  ;;  %1359 = vrcp.f32 %v588_v52  ;;  %v589_v4 = vadd.f32 1.0, %v1342_v56  ;;  %v1749_v41 = vmul.f32 %v689_v28, %v439_v57 }
 0x175   :  { %v1346_v53 = vpop.eup %1345  ;;  %1361 = vrcp.f32 %v601_v19  ;;  %v692_v21 = vmul.f32 %v1344_v58, %v1639_v54 }
 0x176   :  { %v1348_v37 = vpop.eup %1347  ;;  %1363 = vrcp.f32 %v589_v4  ;;  %v443_v8 = vpop.f32.mrb[36].mxu1  ;;  %v604_v15 = vadd.f32 1.0, %v1346_v53 }
 0x177   :  { %v1350_v1 = vpop.eup %1349  ;;  %v1755_v3 = vmul.f32 %v690_v5, %v443_v8  ;;  %v445_v34 = vpop.f32.mrb[37].mxu1  ;;  %1365 = vrcp.f32 %v602_v62  ;;  %v605_v9 = vadd.f32 1.0, %v1348_v37 }
 0x178   :  { %v723_v0 = vmul.f32 %v691_v7, %v445_v34  ;;  %1367 = vrcp.f32 %v603_v44  ;;  %v1352_v47 = vpop.eup %1351  ;;  %v693_v18 = vmul.f32 %v1350_v1, %v1645_v59 }
 0x179   :  { %v1354_v24 = vpop.eup %1353  ;;  %1369 = vrcp.f32 %v604_v15  ;;  %v694_v25 = vmul.f32 %v1352_v47, %v1650_v2 }
 0x17a   :  { %v449_v23 = vpop.f32.mrb[38].mxu1  ;;  %1371 = vrcp.f32 %v605_v9  ;;  %v695_v54 = vmul.f32 %v1354_v24, %v1655_v6 }
 0x17b   :  { %v724_v63 = vmul.f32 %v692_v21, %v449_v23  ;;  %v451_v50 = vpop.f32.mrb[39].mxu1 }
 0x17c   :  { %v1356_v29 = vpop.eup %1355  ;;  %v725_v10 = vmul.f32 %v693_v18, %v451_v50 }
 0x17d   :  { %v1358_v13 = vpop.eup %1357  ;;  %v683_v27 = vmul.f32 %v1356_v29, %v1671_v22 }
 0x17e   :  { %v1360_v43 = vpop.eup %1359  ;;  %v455_v32 = vpop.f32.mrb[40].mxu1  ;;  %v696_v38 = vmul.f32 %v1358_v13, %v1660_v11 }
 0x17f   :  { %v1362_v33 = vpop.eup %1361  ;;  %v684_v59 = vmul.f32 %v1360_v43, %v1677_v30  ;;  %v715_v14 = vmul.f32 %v683_v27, %v1722_v60  ;;  %v726_v40 = vmul.f32 %v694_v25, %v455_v32  ;;  %v457_v45 = vpop.f32.mrb[41].mxu1 }
 0x180   :  { %v1364_v48 = vpop.eup %1363  ;;  %v727_v51 = vmul.f32 %v695_v54, %v457_v45  ;;  %v697_v6 = vmul.f32 %v1362_v33, %v1665_v16 }
 0x181   :  { %v685_v2 = vmul.f32 %v1364_v48, %v1681_v36  ;;  %v716_v22 = vmul.f32 %v684_v59, %v1727_v12  ;;  %876 = vmatprep.mubr.f32.mxu0 %v715_v14  ;;  %v1366_v19 = vpop.eup %1365 }
 0x182   :  { %877 = vmatmul.mubr.f32.gmra.mrb[28].mxu0 %v1739_v35  ;;  %v461_v61 = vpop.f32.mrb[42].mxu1  ;;  %v1368_v30 = vpop.eup %1367  ;;  %v698_v56 = vmul.f32 %v1366_v19, %v1669_v20 }
 0x183   :  { %v717_v60 = vmul.f32 %v685_v2, %v1729_v17  ;;  %v728_v28 = vmul.f32 %v696_v38, %v461_v61  ;;  %v463_v52 = vpop.f32.mrb[43].mxu1  ;;  %v1370_v11 = vpop.eup %1369  ;;  %v699_v36 = vmul.f32 %v1368_v30, %v1674_v26 }
 0x184   :  { %v729_v46 = vmul.f32 %v697_v6, %v463_v52  ;;  %v1372_v57 = vpop.eup %1371  ;;  %v700_v62 = vmul.f32 %v1370_v11, %v1679_v31 }
 0x185   :  { %881 = vmatprep.mubr.f32.mxu0 %v717_v60  ;;  %v701_v17 = vmul.f32 %v1372_v57, %v1683_v39 }
 0x186   :  { %882 = vmatmul.mubr.f32.gmra.mrb[30].mxu0 %v716_v22  ;;  %v467_v12 = vpop.f32.mrb[44].mxu1 }
 0x187   :  { %886 = vmatprep.mubr.f32.mxu0 %v1741_v55  ;;  %v730_v16 = vmul.f32 %v698_v56, %v467_v12  ;;  %v469_v35 = vpop.f32.mrb[45].mxu1 }
 0x188   :  { %v731_v58 = vmul.f32 %v699_v36, %v469_v35 }
 0x18a   :  { %887 = vmatmul.mubr.f32.gmra.mrb[32].mxu0 %v1737_v42  ;;  %v473_v4 = vpop.f32.mrb[46].mxu1 }
 0x18b   :  { %891 = vmatprep.mubr.f32.mxu0 %v1749_v41  ;;  %v732_v20 = vmul.f32 %v700_v62, %v473_v4  ;;  %v475_v53 = vpop.f32.mrb[47].mxu1 }
 0x18c   :  { %v733_v26 = vmul.f32 %v701_v17, %v475_v53 }
 0x18e   :  { %892 = vmatmul.mubr.f32.gmra.mrb[34].mxu0 %v1747_v49 }
 0x18f   :  { %896 = vmatprep.mubr.f32.mxu0 %v723_v0 }
 0x192   :  { %897 = vmatmul.mubr.f32.gmra.mrb[36].mxu0 %v1755_v3 }
 0x193   :  { %901 = vmatprep.mubr.f32.mxu0 %v725_v10 }
 0x196   :  { %902 = vmatmul.mubr.f32.gmra.mrb[38].mxu0 %v724_v63 }
 0x197   :  { %906 = vmatprep.mubr.f32.mxu0 %v727_v51 }
 0x19a   :  { %907 = vmatmul.mubr.f32.gmra.mrb[40].mxu0 %v726_v40 }
 0x19b   :  { %911 = vmatprep.mubr.f32.mxu0 %v729_v46 }
 0x19e   :  { %912 = vmatmul.mubr.f32.gmra.mrb[42].mxu0 %v728_v28 }
 0x19f   :  { %916 = vmatprep.mubr.f32.mxu0 %v731_v58 }
 0x1a2   :  { %917 = vmatmul.mubr.f32.gmra.mrb[44].mxu0 %v730_v16 }
 0x1a3   :  { %921 = vmatprep.mubr.f32.mxu0 %v733_v26 }
 0x1a6   :  { %922 = vmatmul.mubr.f32.gmra.mrb[46].mxu0 %v732_v20 }
 0x226   :  { %v1076_v31 = vpop.f32.mrb[16].mxu0 }
 0x227   :  { %v1077_v39 = vpop.f32.mrb[17].mxu0 }
 0x228   :  { %v1078_v42 = vadd.f32 %v1077_v39, %v1076_v31 }
 0x22a   :  { %978 = vst [vmem:[#allocation9] sm:$0xff] %v1078_v42  ;;  %v1079_v55 = vpop.f32.mrb[18].mxu0 }
 0x22b   :  { %v1080_v41 = vpop.f32.mrb[19].mxu0 }
 0x22c   :  { %v1081_v49 = vadd.f32 %v1080_v41, %v1079_v55 }
 0x22e   :  { %979 = vst [vmem:[#allocation9 + $0x8] sm:$0xff] %v1081_v49  ;;  %v1082_v5 = vpop.f32.mrb[20].mxu0 }
 0x22f   :  { %v1083_v44 = vpop.f32.mrb[21].mxu0 }
 0x230   :  { %v1084_v37 = vadd.f32 %v1083_v44, %v1082_v5 }
 0x232   :  { %980 = vst [vmem:[#allocation9 + $0x10] sm:$0xff] %v1084_v37 }
 0x23c   :  { %v1085_v7 = vpop.f32.mrb[22].mxu0 }
 0x23d   :  { %v1086_v8 = vpop.f32.mrb[23].mxu0 }
 0x23e   :  { %v1087_v1 = vadd.f32 %v1086_v8, %v1085_v7 }
 0x240   :  { %981 = vst [vmem:[#allocation9 + $0x18] sm:$0xff] %v1087_v1  ;;  %v1088_v3 = vpop.f32.mrb[24].mxu0 }
 0x241   :  { %v1089_v34 = vpop.f32.mrb[25].mxu0 }
 0x242   :  { %v1090_v15 = vadd.f32 %v1089_v34, %v1088_v3 }
 0x244   :  { %982 = vst [vmem:[#allocation9 + $0x20] sm:$0xff] %v1090_v15  ;;  %v1091_v0 = vpop.f32.mrb[26].mxu0 }
 0x245   :  { %v1092_v21 = vpop.f32.mrb[27].mxu0 }
 0x246   :  { %v1093_v9 = vadd.f32 %v1092_v21, %v1091_v0 }
 0x248   :  { %983 = vst [vmem:[#allocation9 + $0x28] sm:$0xff] %v1093_v9 }
 0x255   :  { %v1094_v47 = vpop.f32.mrb[28].mxu0 }
 0x256   :  { %v1095_v18 = vpop.f32.mrb[29].mxu0 }
 0x257   :  { %v1096_v23 = vadd.f32 %v1095_v18, %v1094_v47 }
 0x259   :  { %984 = vst [vmem:[#allocation9 + $0x30] sm:$0xff] %v1096_v23  ;;  %v1097_v24 = vpop.f32.mrb[30].mxu0 }
 0x25a   :  { %v1098_v63 = vpop.f32.mrb[31].mxu0 }
 0x25b   :  { %v1099_v50 = vadd.f32 %v1098_v63, %v1097_v24 }
 0x25d   :  { %985 = vst [vmem:[#allocation9 + $0x38] sm:$0xff] %v1099_v50  ;;  %v1100_v29 = vpop.f32.mrb[32].mxu0 }
 0x25e   :  { %v1101_v10 = vpop.f32.mrb[33].mxu0 }
 0x25f   :  { %v1102_v13 = vadd.f32 %v1101_v10, %v1100_v29 }
 0x261   :  { %986 = vst [vmem:[#allocation9 + $0x40] sm:$0xff] %v1102_v13  ;;  %v1103_v25 = vpop.f32.mrb[34].mxu0 }
 0x262   :  { %v1104_v27 = vpop.f32.mrb[35].mxu0 }
 0x263   :  { %v1105_v43 = vadd.f32 %v1104_v27, %v1103_v25 }
 0x265   :  { %987 = vst [vmem:[#allocation9 + $0x48] sm:$0xff] %v1105_v43  ;;  %v1106_v54 = vpop.f32.mrb[36].mxu0 }
 0x266   :  { %v1107_v32 = vpop.f32.mrb[37].mxu0 }
 0x267   :  { %v1108_v33 = vadd.f32 %v1107_v32, %v1106_v54 }
 0x269   :  { %988 = vst [vmem:[#allocation9 + $0x50] sm:$0xff] %v1108_v33  ;;  %v1109_v59 = vpop.f32.mrb[38].mxu0 }
 0x26a   :  { %v1110_v14 = vpop.f32.mrb[39].mxu0 }
 0x26b   :  { %v1111_v40 = vadd.f32 %v1110_v14, %v1109_v59 }
 0x26d   :  { %989 = vst [vmem:[#allocation9 + $0x58] sm:$0xff] %v1111_v40  ;;  %v1112_v45 = vpop.f32.mrb[40].mxu0 }
 0x26e   :  { %v1113_v48 = vpop.f32.mrb[41].mxu0 }
 0x26f   :  { %v1114_v51 = vadd.f32 %v1113_v48, %v1112_v45 }
 0x271   :  { %990 = vst [vmem:[#allocation9 + $0x60] sm:$0xff] %v1114_v51  ;;  %v1115_v38 = vpop.f32.mrb[42].mxu0 }
 0x272   :  { %v1116_v2 = vpop.f32.mrb[43].mxu0 }
 0x273   :  { %v1117_v22 = vadd.f32 %v1116_v2, %v1115_v38 }
 0x275   :  { %991 = vst [vmem:[#allocation9 + $0x68] sm:$0xff] %v1117_v22  ;;  %v1118_v19 = vpop.f32.mrb[44].mxu0 }
 0x276   :  { %v1119_v6 = vpop.f32.mrb[45].mxu0 }
 0x277   :  { %v1120_v61 = vadd.f32 %v1119_v6, %v1118_v19 }
 0x279   :  { %992 = vst [vmem:[#allocation9 + $0x70] sm:$0xff] %v1120_v61  ;;  %v1121_v30 = vpop.f32.mrb[46].mxu0 }
 0x27a   :  { %v1122_v60 = vpop.f32.mrb[47].mxu0 }
 0x27b   :  { %v1123_v28 = vadd.f32 %v1122_v60, %v1121_v30 }
 0x27d   :  { %993 = vst [vmem:[#allocation9 + $0x78] sm:$0xff] %v1123_v28 }
 0x27e   :  { %1450 = shalt.err (!%p1447_p0)
}
 0x27f   :  { %s1451_s27 = scalar_lea.hbm %s1797_s3, 2048 }
 0x280   :  { %p1452_p1 = scmp.ne.s32.totalorder %s1797_s3, %s1451_s27  ;;  %p1455_p2 = scmp.lt.u32.totalorder %s1451_s27, %s1797_s3 }
 0x282   :  { %p1457_p3 = pnand %p1455_p2, %p1452_p1 }
 0x284   :  { %1460 = shalt.err (!%p1457_p3)
}
 0x285   :  { %1005 = dma.vmem_to_hbm [thread:$0]  %s1000_s23, 2048, %s1797_s3, [#allocation5], %s1471_s1, %s1471_s1, %s1472_s9  }
 0x286   :  { %1465 = dma.done.wait [#allocation5], 2048  }
 0x287   :  { %1466 = vsyncadd [#allocation5], 4294965248 }
 0x288   :  { %1009 = vsyncpa [#allocation4], 1 }
 0x289   :  { %1010 = vsyncpa [#allocation7], 1 }
 0x28a   :  { %1011 = vsyncpa [#allocation5], 1 }

</bundles_post_ra>
